<compile_context>
chip_gen: v6e
topology: v6e:2x2x1
jax: 0.10.0
libtpu: 0.0.40
codegen_flags: <defaults>
</compile_context>

<pallas_src>
import functools

import jax
import jax.numpy as jnp
from jax.experimental import pallas as pl
from jax.experimental.pallas import tpu as pltpu

LRELU_SLOPE = 0.2
BN_EPS = 1e-5
VMEM_LIMIT_BYTES = 48 * 1024 * 1024   # fits under v7x's 64 MiB physical VMEM


def _round_up(x, m):
    return (x + m - 1) // m * m


def _choose_tm(m):
    """Pick an M tile (sublane-aligned) and the padded M it requires."""
    m8 = _round_up(m, 8)
    for t in (512, 256, 128):
        if m8 % t == 0:
            return t, m8
    if m8 <= 512:
        return m8, m8
    mp = _round_up(m8, 256)
    return 256, mp


# ---------------------------------------------------------------------------
# Pallas kernels
# ---------------------------------------------------------------------------
def _conv_gemm_kernel(apply_leaky, emit_stats,
                      p_ref, w_ref, b_ref, o_ref, *maybe_stats):
    """bf16 GEMM accumulating directly into the resident f32 output block.

    Epilogue (last K step): + bias, optional LeakyReLU, optional per-tile
    (sum, sum_sq) partial BatchNorm statistics.
    """
    k = pl.program_id(2)

    @pl.when(k == 0)
    def _():
        o_ref[...] = jnp.zeros_like(o_ref)

    o_ref[...] += jnp.dot(p_ref[...], w_ref[...],
                          preferred_element_type=jnp.float32)

    @pl.when(k == pl.num_programs(2) - 1)
    def _():
        y = o_ref[...] + b_ref[...]
        if apply_leaky:
            y = jnp.where(y > 0, y, LRELU_SLOPE * y)
        o_ref[...] = y
        if emit_stats:
            (stats_ref,) = maybe_stats
            tn = y.shape[1]
            s1 = jnp.sum(y, axis=0, keepdims=True)        # (1, tn)
            s2 = jnp.sum(y * y, axis=0, keepdims=True)    # (1, tn)
            stats_ref[...] = jnp.concatenate(
                [s1, s2, jnp.zeros((6, tn), jnp.float32)], axis=0)[None]


def conv_gemm(patches, w_km, bias, *, tm, apply_leaky, emit_stats):
    """patches [M, K] bf16 @ w_km [K, Cp] bf16 + bias -> f32 [M, Cp].

    When emit_stats, also returns per-M-tile partial stats of shape
    [M // tm, 8, Cp] with row 0 = sum, row 1 = sum of squares.
    """
    M, K = patches.shape
    Cp = w_km.shape[1]
    tn = Cp if Cp <= 256 else 256
    tk = K if K <= 4096 else 4096
    assert M % tm == 0 and Cp % tn == 0 and K % tk == 0
    mt, nt, kt = M // tm, Cp // tn, K // tk

    kernel = functools.partial(_conv_gemm_kernel, apply_leaky, emit_stats)

    if emit_stats:
        out_shape = (jax.ShapeDtypeStruct((M, Cp), jnp.float32),
                     jax.ShapeDtypeStruct((mt, 8, Cp), jnp.float32))
        out_specs = [pl.BlockSpec((tm, tn), lambda i, j, k: (i, j)),
                     pl.BlockSpec((1, 8, tn), lambda i, j, k: (i, 0, j))]
    else:
        out_shape = jax.ShapeDtypeStruct((M, Cp), jnp.float32)
        out_specs = pl.BlockSpec((tm, tn), lambda i, j, k: (i, j))

    return pl.pallas_call(
        kernel,
        out_shape=out_shape,
        grid_spec=pltpu.PrefetchScalarGridSpec(
            num_scalar_prefetch=0,
            grid=(mt, nt, kt),
            in_specs=[
                pl.BlockSpec((tm, tk), lambda i, j, k: (i, k)),
                pl.BlockSpec((tk, tn), lambda i, j, k: (k, j)),
                pl.BlockSpec((1, tn), lambda i, j, k: (0, j)),
            ],
            out_specs=out_specs,
        ),
        compiler_params=pltpu.CompilerParams(
            dimension_semantics=("parallel", "parallel", "arbitrary"),
            vmem_limit_bytes=VMEM_LIMIT_BYTES),
    )(patches, w_km, bias.reshape(1, Cp))


def _scale_shift_leaky_kernel(x_ref, s_ref, t_ref, o_ref):
    """y = x * scale + shift, then LeakyReLU(0.2). Single pass, tiled over M."""
    y = x_ref[...] * s_ref[...] + t_ref[...]
    o_ref[...] = jnp.where(y > 0, y, LRELU_SLOPE * y)


def scale_shift_leaky(x_mc, scale, shift, tm):
    M, C = x_mc.shape
    assert M % tm == 0
    return pl.pallas_call(
        _scale_shift_leaky_kernel,
        out_shape=jax.ShapeDtypeStruct((M, C), jnp.float32),
        grid_spec=pltpu.PrefetchScalarGridSpec(
            num_scalar_prefetch=0,
            grid=(M // tm,),
            in_specs=[
                pl.BlockSpec((tm, C), lambda i: (i, 0)),
                pl.BlockSpec((1, C), lambda i: (0, 0)),
                pl.BlockSpec((1, C), lambda i: (0, 0)),
            ],
            out_specs=pl.BlockSpec((tm, C), lambda i: (i, 0)),
        ),
        compiler_params=pltpu.CompilerParams(
            dimension_semantics=("parallel",),
            vmem_limit_bytes=VMEM_LIMIT_BYTES),
    )(x_mc, scale.reshape(1, C), shift.reshape(1, C))


# ---------------------------------------------------------------------------
# Glue (data movement / parameter setup)
# ---------------------------------------------------------------------------
def im2col_nhwc(x_nhwc, ksize, stride, pad):
    """NHWC im2col; K ordered (kh, kw, cin)."""
    N, H, W, C = x_nhwc.shape
    xp = jnp.pad(x_nhwc, ((0, 0), (pad, pad), (pad, pad), (0, 0)))
    Hout = (H + 2 * pad - ksize) // stride + 1
    Wout = (W + 2 * pad - ksize) // stride + 1
    taps = []
    for i in range(ksize):
        for j in range(ksize):
            taps.append(xp[:, i:i + stride * Hout:stride,
                           j:j + stride * Wout:stride, :])
    patches = jnp.stack(taps, axis=3)                     # N, Ho, Wo, kk, C
    patches = patches.reshape(N * Hout * Wout, ksize * ksize * C)
    return patches, Hout, Wout


def init_params(key, input_dim, hidden=64):
    # (cin, cout, stride, has_bias, has_bn, has_leaky) — mirrors nn.Sequential
    specs = [
        (input_dim, hidden, 2, False, False, True),
        (hidden, 2 * hidden, 2, False, True, True),
        (2 * hidden, 4 * hidden, 2, False, True, True),
        (4 * hidden, 8 * hidden, 2, False, True, True),
        (8 * hidden, 8 * hidden, 1, False, True, True),
        (8 * hidden, 1, 1, True, False, False),
    ]
    params = []
    for (cin, cout, stride, has_bias, has_bn, has_leaky) in specs:
        key, kw_, kb_, kg_, kbeta = jax.random.split(key, 5)
        w = 0.02 * jax.random.normal(kw_, (cout, cin, 4, 4), jnp.float32)
        b = (0.02 * jax.random.normal(kb_, (cout,), jnp.float32)
             if has_bias else jnp.zeros((cout,), jnp.float32))
        gamma = (1.0 + 0.1 * jax.random.normal(kg_, (cout,), jnp.float32)
                 if has_bn else None)
        beta = (0.1 * jax.random.normal(kbeta, (cout,), jnp.float32)
                if has_bn else None)
        params.append(dict(w=w, b=b, gamma=gamma, beta=beta, stride=stride,
                           has_bn=has_bn, has_leaky=has_leaky))
    return params


def discriminator_forward(params, x_nchw):
    # Single NCHW -> NHWC conversion at the entry; NHWC everywhere inside.
    x = jnp.transpose(x_nchw, (0, 2, 3, 1))
    N = x.shape[0]
    for p in params:
        cout = p["w"].shape[0]
        cout_pad = max(_round_up(cout, 128), 128)

        # im2col in bf16 (halves the materialized patch HBM traffic).
        patches, Hout, Wout = im2col_nhwc(
            x.astype(jnp.bfloat16), 4, p["stride"], 1)
        M = patches.shape[0]
        tm, M_pad = _choose_tm(M)
        if M_pad != M:
            patches = jnp.pad(patches, ((0, M_pad - M), (0, 0)))

        # Weights: OIHW -> (kh, kw, cin, cout) -> [K, Cout], bf16, lane-padded.
        w_km = p["w"].transpose(2, 3, 1, 0).reshape(-1, cout)
        bias = p["b"]
        if cout_pad != cout:
            w_km = jnp.pad(w_km, ((0, 0), (0, cout_pad - cout)))
            bias = jnp.pad(bias, (0, cout_pad - cout))
        w_km = w_km.astype(jnp.bfloat16)

        if p["has_bn"]:
            y, stats = conv_gemm(patches, w_km, bias, tm=tm,
                                 apply_leaky=False, emit_stats=True)
            # Combine tiny per-tile partials (zero-padded rows contribute 0,
            # and bias is 0 on BN layers, so dividing by the real M is exact).
            s1 = jnp.sum(stats[:, 0, :], axis=0)
            s2 = jnp.sum(stats[:, 1, :], axis=0)
            mean = s1 / M
            var = s2 / M - mean * mean                 # f32 accumulation
            scale = p["gamma"] * jax.lax.rsqrt(var[:cout] + BN_EPS)
            shift = p["beta"] - mean[:cout] * scale
            y = scale_shift_leaky(y, scale, shift, tm)
        else:
            y = conv_gemm(patches, w_km, bias, tm=tm,
                          apply_leaky=p["has_leaky"], emit_stats=False)

        y = y[:M, :cout]                               # drop M / lane padding
        x = y.reshape(N, Hout, Wout, cout)             # stay in NHWC
    return jnp.transpose(x, (0, 3, 1, 2))              # NCHW once, at the end


def reference_forward(params, x):
    """Pure-JAX f32 reference (lax conv) mirroring the PyTorch forward."""
    for p in params:
        y = jax.lax.conv_general_dilated(
            x, p["w"], (p["stride"], p["stride"]), [(1, 1), (1, 1)],
            dimension_numbers=("NCHW", "OIHW", "NCHW"))
        y = y + p["b"].reshape(1, -1, 1, 1)
        if p["has_bn"]:
            mean = jnp.mean(y, axis=(0, 2, 3), keepdims=True)
            var = jnp.mean((y - mean) ** 2, axis=(0, 2, 3), keepdims=True)
            y = (y - mean) * jax.lax.rsqrt(var + BN_EPS)
            y = y * p["gamma"].reshape(1, -1, 1, 1) + p["beta"].reshape(1, -1, 1, 1)
        if p["has_leaky"]:
            y = jnp.where(y > 0, y, LRELU_SLOPE * y)
        x = y
    return x


if __name__ == "__main__":
    key = jax.random.PRNGKey(0)
    kx, kp = jax.random.split(key)
    # Smallest spatial size that survives 4 stride-2 + 2 stride-1 4x4 convs.
    N, C, H, W = 2, 3, 48, 48
    x = jax.random.normal(kx, (N, C, H, W), jnp.float32)
    params = init_params(kp, C)

    out = jax.block_until_ready(discriminator_forward(params, x))
    ref = jax.block_until_ready(reference_forward(params, x))

    assert out.shape == ref.shape == (N, 1, 1, 1), (out.shape, ref.shape)
    # Tolerance relaxed vs the all-f32 version: GEMM operands are bf16
    # (f32 accumulation), reference is pure f32.
    err = float(jnp.max(jnp.abs(out - ref)))
    assert jnp.allclose(out, ref, rtol=3e-2, atol=3e-2), err
    print("KERNEL_OK")
</pallas_src>

<mosaic_0001>
module attributes {stable_mosaic.version = 11 : i64} {
  func.func @_conv_gemm_kernel(%arg0: i32, %arg1: i32, %arg2: i32, %arg3: memref<128x48xbf16, #tpu.memory_space<vmem>>, %arg4: memref<48x128xbf16, #tpu.memory_space<vmem>>, %arg5: memref<1x128xf32, #tpu.memory_space<vmem>>, %arg6: memref<128x128xf32, #tpu.memory_space<vmem>>) attributes {dimension_semantics = [#tpu.dimension_semantics<parallel>, #tpu.dimension_semantics<parallel>, #tpu.dimension_semantics<arbitrary>], iteration_bounds = array<i64: 9, 1, 1>, scalar_prefetch = 0 : i64, scratch_operands = 0 : i64, tpu.core_type = #tpu.core_type<tc>, window_params = [{transform_indices = @transform_0, window_bounds = array<i64: 128, 48>}, {transform_indices = @transform_1, window_bounds = array<i64: 48, 128>}, {transform_indices = @transform_2, window_bounds = array<i64: 1, 128>}, {transform_indices = @transform_3, window_bounds = array<i64: 128, 128>}]} {
    %c0_i32 = arith.constant 0 : i32
    %0 = arith.cmpi eq, %arg2, %c0_i32 : i32
    %1 = arith.extui %0 : i1 to i32
    %c0_i32_0 = arith.constant 0 : i32
    %2 = arith.cmpi ne, %1, %c0_i32_0 : i32
    scf.if %2 {
      %cst_10 = arith.constant 0.000000e+00 : f32
      %12 = vector.broadcast %cst_10 : f32 to vector<128x128xf32>
      %c0_11 = arith.constant 0 : index
      %c0_12 = arith.constant 0 : index
      %13 = vector.load %arg6[%c0_11, %c0_12] : memref<128x128xf32, #tpu.memory_space<vmem>>, vector<128x128xf32>
      tpu.vector_store %arg6[%c0_11, %c0_12], %12 {strides = array<i32>} : memref<128x128xf32, #tpu.memory_space<vmem>>, vector<128x128xf32>,
    } else {
    }
    %c0 = arith.constant 0 : index
    %c0_1 = arith.constant 0 : index
    %3 = vector.load %arg6[%c0, %c0_1] : memref<128x128xf32, #tpu.memory_space<vmem>>, vector<128x128xf32>
    %c0_2 = arith.constant 0 : index
    %c0_3 = arith.constant 0 : index
    %4 = vector.load %arg3[%c0_2, %c0_3] : memref<128x48xbf16, #tpu.memory_space<vmem>>, vector<128x48xbf16>
    %c0_4 = arith.constant 0 : index
    %c0_5 = arith.constant 0 : index
    %5 = vector.load %arg4[%c0_4, %c0_5] : memref<48x128xbf16, #tpu.memory_space<vmem>>, vector<48x128xbf16>
    %cst = arith.constant dense<0.000000e+00> : vector<128x128xf32>
    %6 = tpu.matmul %4, %5, %cst {dimension_numbers = #tpu.dot_dimension_numbers<[1], [0], [0], [1], [0, 0, 1, 1], [], []>} : vector<128x48xbf16>, vector<48x128xbf16>, vector<128x128xf32> -> vector<128x128xf32>
    %7 = arith.addf %3, %6 : vector<128x128xf32>
    %c0_6 = arith.constant 0 : index
    %c0_7 = arith.constant 0 : index
    %8 = vector.load %arg6[%c0_6, %c0_7] : memref<128x128xf32, #tpu.memory_space<vmem>>, vector<128x128xf32>
    tpu.vector_store %arg6[%c0_6, %c0_7], %7 {strides = array<i32>} : memref<128x128xf32, #tpu.memory_space<vmem>>, vector<128x128xf32>,
    %c0_i32_8 = arith.constant 0 : i32
    %9 = arith.cmpi eq, %arg2, %c0_i32_8 : i32
    %10 = arith.extui %9 : i1 to i32
    %c0_i32_9 = arith.constant 0 : i32
    %11 = arith.cmpi ne, %10, %c0_i32_9 : i32
    scf.if %11 {
      %c0_10 = arith.constant 0 : index
      %c0_11 = arith.constant 0 : index
      %12 = vector.load %arg6[%c0_10, %c0_11] : memref<128x128xf32, #tpu.memory_space<vmem>>, vector<128x128xf32>
      %c0_12 = arith.constant 0 : index
      %c0_13 = arith.constant 0 : index
      %13 = vector.load %arg5[%c0_12, %c0_13] : memref<1x128xf32, #tpu.memory_space<vmem>>, vector<1x128xf32>
      %14 = vector.broadcast %13 : vector<1x128xf32> to vector<128x128xf32>
      %15 = arith.addf %12, %14 : vector<128x128xf32>
      %cst_14 = arith.constant 0.000000e+00 : f32
      %16 = vector.broadcast %cst_14 : f32 to vector<128x128xf32>
      %17 = arith.cmpf ogt, %15, %16 : vector<128x128xf32>
      %cst_15 = arith.constant 2.000000e-01 : f32
      %18 = vector.broadcast %cst_15 : f32 to vector<128x128xf32>
      %19 = arith.mulf %18, %15 : vector<128x128xf32>
      %20 = arith.select %17, %15, %19 : vector<128x128xi1>, vector<128x128xf32>
      %c0_16 = arith.constant 0 : index
      %c0_17 = arith.constant 0 : index
      %21 = vector.load %arg6[%c0_16, %c0_17] : memref<128x128xf32, #tpu.memory_space<vmem>>, vector<128x128xf32>
      tpu.vector_store %arg6[%c0_16, %c0_17], %20 {strides = array<i32>} : memref<128x128xf32, #tpu.memory_space<vmem>>, vector<128x128xf32>,
    } else {
    }
    return
  }
  func.func @transform_0(%arg0: i32, %arg1: i32, %arg2: i32) -> (i32, i32) {
    %c0_i32 = arith.constant 0 : i32
    return %arg0, %arg2 : i32, i32
  }
  func.func @transform_1(%arg0: i32, %arg1: i32, %arg2: i32) -> (i32, i32) {
    %c0_i32 = arith.constant 0 : i32
    return %arg2, %arg1 : i32, i32
  }
  func.func @transform_2(%arg0: i32, %arg1: i32, %arg2: i32) -> (i32, i32) {
    %c0_i32 = arith.constant 0 : i32
    %c0_i32_0 = arith.constant 0 : i32
    return %c0_i32, %arg1 : i32, i32
  }
  func.func @transform_3(%arg0: i32, %arg1: i32, %arg2: i32) -> (i32, i32) {
    %c0_i32 = arith.constant 0 : i32
    return %arg0, %arg1 : i32, i32
  }
}

</mosaic_0001>

<bundles_post_ra>
// kernel: tpu_custom_call.1
= control target key start
LH: loop header
LB: loop body
LE: loop exit
PB: predicated region body
PF: predicated region fallthrough
CT: control target
= control target key end

     0   :  { %8 = vsyncpa [#allocation3], 0  ;;  %s1170_s0 = inlined_call_operand.vmem [shape: bf16[1152,48], index: 0, kind: input, shape index: {}]   ;;  %s1171_s1 = inlined_call_operand.vmem [shape: bf16[48,128], index: 1, kind: input, shape index: {}]   ;;  %s1172_s2 = inlined_call_operand.vmem [shape: f32[1,128], index: 2, kind: input, shape index: {}]   ;;  %s1173_s3 = inlined_call_operand.hbm [shape: f32[1152,128], index: 3, kind: output, shape index: {}]  }
   0x1   :  { %10 = vsyncpa [#allocation3 + $0x1], 0  ;;  %s996_s12 = smov 0   ;;  %s998_s13 = smov 0  }
   0x2   :  { %s1000_s14 = smov 0   ;;  %s1002_s15 = smov 0  }
   0x3   :  { %s1004_s16 = smov 0   ;;  %s1006_s17 = smov 0  }
   0x4 LB: > { %s751_s18 = sadd.s32 4294967295, %s971_s17   ;;  %s752_s19 = sadd.s32 4294967294, %s971_s17   ;;  %s971_s17 = sphi %s1006_s17, %s16_s17   ;;  %s967_s16 = sphi %s1004_s16, %s1180_s16   ;;  %s963_s15 = sphi %s1002_s15, %s1179_s15   ;;  %s959_s14 = sphi %s1000_s14, %s1178_s14   ;;  %s955_s13 = sphi %s998_s13, %s1177_s13   ;;  %s951_s12 = sphi %s996_s12, %s1176_s12  }
   0x5   : > { %s35_s20 = sadd.s32 1, %s967_s16  ;;  %s126_s21 = sadd.s32 1, %s959_s14 }
   0x6   : > { %p37_p0 = scmp.ge.s32.totalorder %s35_s20, 9  ;;  %p136_p1 = scmp.ne.s32.totalorder %s959_s14, %s955_s13 }
   0x7   : > { %p137_p2 = scmp.eq.s32.totalorder %s751_s18, 8  ;;  %p142_p3 = scmp.ne.s32.totalorder %s955_s13, %s951_s12 }
   0x8   : > { %s1182_s20 = smov (%p37_p0, %s35_s20), 0  ;;  %p143_p5 = scmp.eq.s32.totalorder %s752_s19, 8 }
   0x9   : > { %p1036_p4 = por %p137_p2, %p136_p1  ;;  %s121_s23 = ssub.s32 %s967_s16, %s1182_s20 }
   0xa   : > { %p757_p6 = scmp.ge.s32.totalorder %s971_s17, 1  ;;  %p124_p7 = scmp.eq.s32.totalorder %s121_s23, 0 }
   0xb   : > { %p1043_p8 = por %p143_p5, %p142_p3  ;;  %p191_p9 = scmp.lt.s32.totalorder %s971_s17, 10 }
   0xc   : > { %s1049_s25 = scalar_select %p124_p7, %s959_s14, %s126_s21  }
   0xd   : > { %p192_p10 = pnand %p757_p6, %p191_p9 }
   0xe   : > { %s759_s28 = sshll.u32 (!%p192_p10), %s963_s15, 4  ;;  %s226_s10 = sand.u32 (!%p192_p10), 1, %s955_s13  }
   0xf   : > { %195 = sbr.rel (%p192_p10) target bundleno = 260 (0x104), region = 32  ;;  %p230_p11 = scmp.lt.s32.totalorder (!%p192_p10), %s759_s28, 143 }
  0x10   : > { %s758_s19 = sshll.u32 (!%p192_p10), %s226_s10, 7  ;;  %s786_s23 = sshll.u32 (!%p192_p10), %s963_s15, 11 }
  0x11   : > { %s1084_s21 = scalar_lea.vmem (!%p192_p10), [#allocation2], %s758_s19  ;;  %s1125_s29 = scalar_lea.sflag (!%p192_p10), [#allocation3], %s226_s10 }
  0x12   : > { %s643_s26 = sshll.u32 (!%p192_p10), %s1084_s21, 4  ;;  %s973_s4 = smov (!%p192_p10), [#allocation2]   ;;  %s1117_s26 = int_to_ptr.vmem [resolvable:$true] %s643_s26 }
  0x13   : > { %s895_s30 = scalar_lea.vmem (!%p192_p10), %s1117_s26, 2048  ;;  %s899_s5 = sshll.u32 (!%p192_p10), %s973_s4, 4  ;;  %s900_s5 = int_to_ptr.vmem [resolvable:$false] %s899_s5 }
  0x14   : > { %v884_v0 = vld [vmem:[%s1171_s1 + $0x10] sm:$0xff]   ;;  %v885_v1 = vld [vmem:[%s1171_s1 + $0x8] sm:$0xff]   ;;  %s1184_s28 = smov (!%p230_p11, %s759_s28), 143  ;;  %v886_v2 = vld [vmem:[%s1171_s1] sm:$0xff]   ;;  %vm368_vm0 = vcmask 392192   ;;  %p896_p12 = scmp.ne.s32.totalorder %s1117_s26, %s895_s30 }
  0x15   : > { %798 = vmatprep.subr.bf16.mxu0 %v884_v0  ;;  %820 = vmatprep.subr.bf16.mxu1 %v884_v0  ;;  %s760_s6 = sshll.u32 %s1184_s28, 2  ;;  %v1076_v12 = vld [vmem:[%s1172_s2] ss:$0 sm:$0xff]  ;;  %s1115_s28 = scalar_lea.hbm %s1173_s3, %s786_s23 }
  0x16   : > { %799 = vmatpush3.bf16.msra.mxu0 %v884_v0  ;;  %823 = vmatpush3.bf16.msra.mxu1 %v884_v0  ;;  %s236_s9 = scalar_lea.vmem %s1170_s0, %s760_s6  ;;  %p897_p13 = pnand %p896_p12, %p1036_p4 }
  0x17   : > { %800 = vmatprep.subr.bf16.mxu0 %v885_v1  ;;  %821 = vmatprep.subr.bf16.mxu1 %v885_v1  ;;  %v887_v3 = vld [vmem:[%s236_s9] sm:$0xff]   ;;  %v889_v5 = vld [vmem:[%s236_s9 + $0x8] sm:$0xff]   ;;  %v891_v7 = vld [vmem:[%s236_s9 + $0x10] sm:$0xff]   ;;  %s901_s6 = scalar_lea.vmem %s900_s5, 4096  ;;  %p902_p1 = scmp.lt.s32.totalorder %s1117_s26, %s900_s5 }
  0x18   : > { %v888_v4 = vld [vmem:[%s236_s9 + $0x20] sm:$0xff]   ;;  %804 = vmatprep.mubr.msk.bf16.mxu0 %vm368_vm0, %v887_v3  ;;  %v890_v6 = vld [vmem:[%s236_s9 + $0x28] sm:$0xff]   ;;  %v892_v8 = vld [vmem:[%s236_s9 + $0x30] sm:$0xff]   ;;  %p898_p0 = pneg %p897_p13  ;;  %p903_p2 = scmp.lt.s32.totalorder %s901_s6, %s895_s30 }
  0x19   : > { %812 = vmatprep.mubr.msk.bf16.mxu1 %vm368_vm0, %v888_v4  ;;  %v893_v9 = vld [vmem:[%s236_s9 + $0x18] sm:$0xff]  }
  0x1a   : > { %801 = vmatpush3.bf16.msra.mxu0 %v885_v1  ;;  %824 = vmatpush3.bf16.msra.mxu1 %v885_v1  ;;  %v894_v10 = vld [vmem:[%s236_s9 + $0x38] sm:$0xff]   ;;  %p904_p3 = por %p903_p2, %p902_p1 }
  0x1b   : > { %802 = vmatprep.subr.bf16.mxu0 %v886_v2  ;;  %822 = vmatprep.subr.bf16.mxu1 %v886_v2 }
  0x1c   : > { %p905_p5 = pnand %p904_p3, %p898_p0 }
  0x1e   : > { %803 = vmatpush3.bf16.msra.mxu0 %v886_v2  ;;  %825 = vmatpush3.bf16.msra.mxu1 %v886_v2 }
  0x21   : > { %805 = vmatmul.mubr.msk.bf16.vlgmr.msra.gmra.mxu0 %vm368_vm0, %v889_v5  ;;  %813 = vmatmul.mubr.msk.bf16.vlgmr.msra.gmra.mxu1 %vm368_vm0, %v890_v6 }
  0x22   : > { %808 = vmatprep.mubr.msk.bf16.mxu0 %vm368_vm0, %v891_v7  ;;  %816 = vmatprep.mubr.msk.bf16.mxu1 %vm368_vm0, %v892_v8 }
  0x29   : > { %809 = vmatmul.mubr.msk.bf16.gmra.mxu0 %vm368_vm0, %v893_v9  ;;  %817 = vmatmul.mubr.msk.bf16.gmra.mxu1 %vm368_vm0, %v894_v10 }
  0xe1   : > { %v806_v11 = vpop.f32.mrf.mxu0  ;;  %v814_v13 = vpop.f32.mrf.mxu1 }
  0xe2   : > { %v550_v16 = vadd.f32 %v806_v11, %v1076_v12  ;;  %v558_v17 = vadd.f32 %v814_v13, %v1076_v12 }
  0xe3   : > { %v427_v14 = vpop.f32.mrf.mxu0  ;;  %v459_v15 = vpop.f32.mrf.mxu1 }
  0xe4   : > { %vm566_vm1 = vcmp.gt.f32.partialorder %v550_v16, 0.0  ;;  %v582_v20 = vmul.f32 0.2, %v550_v16  ;;  %vm574_vm2 = vcmp.gt.f32.partialorder %v558_v17, 0.0  ;;  %v590_v21 = vmul.f32 0.2, %v558_v17 }
  0xe5   : > { %v807_v18 = vpop.f32.mrf.mxu0  ;;  %v815_v19 = vpop.f32.mrf.mxu1  ;;  %v548_v22 = vadd.f32 %v1076_v12, %v427_v14  ;;  %v556_v23 = vadd.f32 %v1076_v12, %v459_v15 }
  0xe6   : > { %v598_v26 = vsel %vm566_vm1, %v550_v16, %v582_v20  ;;  %v606_v27 = vsel %vm574_vm2, %v558_v17, %v590_v21  ;;  %v551_v32 = vadd.f32 %v807_v18, %v1076_v12  ;;  %v559_v33 = vadd.f32 %v815_v19, %v1076_v12 }
  0xe7   : > { %v430_v24 = vpop.f32.mrf.mxu0  ;;  %v462_v25 = vpop.f32.mrf.mxu1  ;;  %614 = vst [vmem:[%s1084_s21 + $0x10] sm:$0xff] %v598_v26  ;;  %622 = vst [vmem:[%s1084_s21 + $0x50] sm:$0xff] %v606_v27  ;;  %vm564_vm3 = vcmp.gt.f32.partialorder %v548_v22, 0.0  ;;  %v580_v28 = vmul.f32 0.2, %v548_v22  ;;  %vm572_vm4 = vcmp.gt.f32.partialorder %v556_v23, 0.0 }
  0xe8   : > { %v588_v29 = vmul.f32 0.2, %v556_v23  ;;  %v549_v34 = vadd.f32 %v1076_v12, %v430_v24  ;;  %v557_v35 = vadd.f32 %v1076_v12, %v462_v25  ;;  %vm567_vm5 = vcmp.gt.f32.partialorder %v551_v32, 0.0 }
  0xe9   : > { %v810_v30 = vpop.f32.mrf.mxu0  ;;  %v818_v31 = vpop.f32.mrf.mxu1  ;;  %v596_v36 = vsel %vm564_vm3, %v548_v22, %v580_v28  ;;  %v583_v40 = vmul.f32 0.2, %v551_v32  ;;  %vm575_vm6 = vcmp.gt.f32.partialorder %v559_v33, 0.0  ;;  %v591_v41 = vmul.f32 0.2, %v559_v33 }
  0xea   : > { %v604_v37 = vsel %vm572_vm4, %v556_v23, %v588_v29  ;;  %612 = vst [vmem:[%s1084_s21] sm:$0xff] %v596_v36  ;;  %vm565_vm7 = vcmp.gt.f32.partialorder %v549_v34, 0.0  ;;  %v581_v42 = vmul.f32 0.2, %v549_v34  ;;  %vm573_vm8 = vcmp.gt.f32.partialorder %v557_v35, 0.0 }
  0xeb   : > { %v443_v38 = vpop.f32.mrf.mxu0  ;;  %v475_v39 = vpop.f32.mrf.mxu1  ;;  %620 = vst [vmem:[%s1084_s21 + $0x40] sm:$0xff] %v604_v37  ;;  %v589_v43 = vmul.f32 0.2, %v557_v35  ;;  %v599_v46 = vsel %vm567_vm5, %v551_v32, %v583_v40  ;;  %v607_v47 = vsel %vm575_vm6, %v559_v33, %v591_v41  ;;  %v554_v48 = vadd.f32 %v810_v30, %v1076_v12 }
  0xec   : > { %v562_v49 = vadd.f32 %v818_v31, %v1076_v12  ;;  %615 = vst [vmem:[%s1084_s21 + $0x18] sm:$0xff] %v599_v46  ;;  %623 = vst [vmem:[%s1084_s21 + $0x58] sm:$0xff] %v607_v47  ;;  %v597_v50 = vsel %vm565_vm7, %v549_v34, %v581_v42  ;;  %v552_v56 = vadd.f32 %v1076_v12, %v443_v38 }
  0xed   : > { %v811_v44 = vpop.f32.mrf.mxu0  ;;  %v819_v45 = vpop.f32.mrf.mxu1  ;;  %v605_v51 = vsel %vm573_vm8, %v557_v35, %v589_v43  ;;  %613 = vst [vmem:[%s1084_s21 + $0x8] sm:$0xff] %v597_v50  ;;  %vm570_vm9 = vcmp.gt.f32.partialorder %v554_v48, 0.0  ;;  %v586_v54 = vmul.f32 0.2, %v554_v48  ;;  %v560_v57 = vadd.f32 %v1076_v12, %v475_v39 }
  0xee   : > { %621 = vst [vmem:[%s1084_s21 + $0x48] sm:$0xff] %v605_v51  ;;  %vm578_vm10 = vcmp.gt.f32.partialorder %v562_v49, 0.0  ;;  %v594_v55 = vmul.f32 0.2, %v562_v49  ;;  %vm568_vm11 = vcmp.gt.f32.partialorder %v552_v56, 0.0  ;;  %v555_v62 = vadd.f32 %v811_v44, %v1076_v12 }
  0xef   : > { %v446_v52 = vpop.f32.mrf.mxu0  ;;  %v478_v53 = vpop.f32.mrf.mxu1  ;;  %v602_v58 = vsel %vm570_vm9, %v554_v48, %v586_v54  ;;  %v584_v60 = vmul.f32 0.2, %v552_v56  ;;  %vm576_vm12 = vcmp.gt.f32.partialorder %v560_v57, 0.0  ;;  %v592_v61 = vmul.f32 0.2, %v560_v57 }
  0xf0   : > { %v610_v59 = vsel %vm578_vm10, %v562_v49, %v594_v55  ;;  %618 = vst [vmem:[%s1084_s21 + $0x30] sm:$0xff] %v602_v58  ;;  %v563_v63 = vadd.f32 %v819_v45, %v1076_v12  ;;  %v553_v0 = vadd.f32 %v1076_v12, %v446_v52  ;;  %v561_v1 = vadd.f32 %v1076_v12, %v478_v53 }
  0xf1   : > { %626 = vst [vmem:[%s1084_s21 + $0x70] sm:$0xff] %v610_v59  ;;  %v600_v2 = vsel %vm568_vm11, %v552_v56, %v584_v60  ;;  %v608_v3 = vsel %vm576_vm12, %v560_v57, %v592_v61  ;;  %vm571_vm13 = vcmp.gt.f32.partialorder %v555_v62, 0.0  ;;  %v587_v4 = vmul.f32 0.2, %v555_v62 }
  0xf2   : > { %616 = vst [vmem:[%s1084_s21 + $0x20] sm:$0xff] %v600_v2  ;;  %624 = vst [vmem:[%s1084_s21 + $0x60] sm:$0xff] %v608_v3  ;;  %vm579_vm14 = vcmp.gt.f32.partialorder %v563_v63, 0.0  ;;  %v595_v5 = vmul.f32 0.2, %v563_v63  ;;  %vm569_vm15 = vcmp.gt.f32.partialorder %v553_v0, 0.0 }
  0xf3   : > { %v585_v6 = vmul.f32 0.2, %v553_v0  ;;  %vm577_vm0 = vcmp.gt.f32.partialorder %v561_v1, 0.0  ;;  %v593_v7 = vmul.f32 0.2, %v561_v1  ;;  %v603_v8 = vsel %vm571_vm13, %v555_v62, %v587_v4 }
  0xf4   : > { %v611_v9 = vsel %vm579_vm14, %v563_v63, %v595_v5  ;;  %619 = vst [vmem:[%s1084_s21 + $0x38] sm:$0xff] %v603_v8 }
  0xf5   : > { %627 = vst [vmem:[%s1084_s21 + $0x78] sm:$0xff] %v611_v9  ;;  %v601_v10 = vsel %vm569_vm15, %v553_v0, %v585_v6  ;;  %v609_v11 = vsel %vm577_vm0, %v561_v1, %v593_v7 }
  0xf6   : > { %617 = vst [vmem:[%s1084_s21 + $0x28] sm:$0xff] %v601_v10  ;;  %625 = vst [vmem:[%s1084_s21 + $0x68] sm:$0xff] %v609_v11 }
  0xf7   : > { %908 = shalt.err (!%p905_p5)
}
  0xf8   : > { %s909_s7 = scalar_lea.hbm %s1115_s28, 2048  ;;  %s913_s10 = scalar_lea.hbm %s1173_s3, 18432 }
  0xf9   : > { %p910_p6 = scmp.ne.s32.totalorder %s1115_s28, %s909_s7  ;;  %p914_p10 = scmp.lt.s32.totalorder %s1115_s28, %s1173_s3 }
  0xfa   : > { %p915_p11 = scmp.lt.s32.totalorder %s913_s10, %s909_s7 }
  0xfb   : > { %p911_p7 = pnand %p910_p6, %p1036_p4 }
  0xfc   : > { %p916_p12 = por %p915_p11, %p914_p10 }
  0xfd   : > { %p912_p9 = pneg %p911_p7 }
  0xff   : > { %p917_p13 = pnand %p916_p12, %p912_p9 }
 0x101   : > { %920 = shalt.err (!%p917_p13)
}
 0x102   : > { %s974_s19 = smov 128   ;;  %s975_s21 = smov 8  }
 0x103   : > { %826 = dma.vmem_to_hbm [thread:$0]  (%p1036_p4), %s1117_s26, 2048, %s1115_s28, %s1125_s29, %s974_s19, %s974_s19, %s975_s21  }
 0x104 PF: > { %p832_p0 = scmp.ge.s32.totalorder %s971_s17, 2  ;;  %s658_s23 = sand.u32 1, %s951_s12  }
 0x105   : > { %s659_s15 = scalar_lea.sflag [#allocation3], %s658_s23 }
 0x106   : > { %p829_p1 = pnand %p832_p0, %p1043_p8 }
 0x108   : > { %p830_p2 = pneg %p829_p1 }
 0x10a   : > { %946 = dma.done.wait (%p830_p2), %s659_s15, 2048  }
 0x10b   : > { %948 = vsyncadd (%p830_p2), %s659_s15, 4294965248  ;;  %s16_s17 = sadd.s32 1, %s971_s17   ;;  %s1176_s12 = smov %s955_s13 }
 0x10c   : > { %p13_p3 = scmp.ge.s32.totalorder %s16_s17, 11   ;;  %s1177_s13 = smov %s959_s14 }
 0x10d   : > { %s1178_s14 = smov %s1049_s25  ;;  %s1179_s15 = smov %s967_s16 }
 0x10e   : > { %s1180_s16 = smov %s1182_s20  ;;  %15 = sbr.rel (!%p13_p3) target bundleno = 4 (0x4), region = 81 }
 0x113   :  { %664 = vsyncpa [#allocation3], 1 }
 0x114   :  { %666 = vsyncpa [#allocation3 + $0x1], 1 }

</bundles_post_ra>
